<compile_context>
chip_gen: v7x
topology: tpu7x:2x2x1
jax: 0.10.0
libtpu: 0.0.40
codegen_flags: <defaults>
</compile_context>

<pallas_src>
import functools

import jax
import jax.numpy as jnp
import numpy as np
from jax.experimental import pallas as pl
from jax.experimental.pallas import tpu as pltpu


def _round_up(a, b):
    return ((a + b - 1) // b) * b


def _sdiag_kernel(x_ref, lin_ref, quad_ref, const_ref, out_ref):
    """One row-tile of  out = x @ lin + (x (x) x) @ quad + const.

    x_ref     : [TN, D]
    lin_ref   : [D, O]        (resident across grid)
    quad_ref  : [D*D, O]      quad[i*D+j, o] = Tquad[o, i, j]   (resident)
    const_ref : [1, O]        (resident)
    out_ref   : [TN, O]
    """
    x = x_ref[...]                                   # [TN, D]
    d = x.shape[1]

    # Linear term (MXU).
    acc = jnp.dot(x, lin_ref[...], preferred_element_type=jnp.float32)   # [TN, O]

    # Outer-product features xx[n, i*D + j] = x[n, i] * x[n, j]:
    # D cheap VPU broadcast-multiplies + one lane-concat, then a single
    # K = D*D matmul instead of D tiny matmuls with a serialized accumulator.
    xx = jnp.concatenate([x * x[:, i:i + 1] for i in range(d)], axis=1)   # [TN, D*D]
    acc = acc + jnp.dot(xx, quad_ref[...], preferred_element_type=jnp.float32)

    acc = acc + const_ref[...]                       # broadcast [1, O]
    out_ref[...] = acc.astype(out_ref.dtype)         # single full-block store


def prepare_sdiag_fg_params(FTlin, FTquad, Fconst, GTlin, GTquad, Gconst,
                            matrices_to_learn='FG'):
    """Host-side weight reshuffle into kernel-friendly layouts.

    Pure data movement -- hoist this out of the per-step path (or rely on jit
    constant folding) when the buffers are reused across many forward calls.
    """
    D = FTlin.shape[0]

    def flat_quad(A):
        # [O, D_in1, D_in2] -> [D*D, O] with quad[i*D+j, o] = A[o, i, j]
        return jnp.transpose(A, (1, 2, 0)).reshape(D * D, D)

    if matrices_to_learn == 'F':
        lin = FTlin.T                                   # [D, D]
        quad = flat_quad(FTquad)                        # [D*D, D]
        const = Fconst.reshape(1, D)
    elif matrices_to_learn == 'G':
        lin = GTlin.T
        quad = flat_quad(GTquad)
        const = Gconst.reshape(1, D)
    elif matrices_to_learn == 'FG':
        lin = jnp.concatenate([FTlin.T, GTlin.T], axis=1)                    # [D, 2D]
        quad = jnp.concatenate([flat_quad(FTquad), flat_quad(GTquad)], axis=1)  # [D*D, 2D]
        const = jnp.concatenate([Fconst, Gconst]).reshape(1, 2 * D)
    else:
        raise ValueError(matrices_to_learn)
    return lin, quad, const


@functools.partial(jax.jit, static_argnames=('tile_n',))
def sdiag_fg_apply(x, lin, quad, const, *, tile_n=512):
    """Pallas call: out[n, o] = sum_i x[n,i] lin[i,o]
                              + sum_{i,j} x[n,i] x[n,j] quad[i*D+j, o] + const[o]."""
    N, D = x.shape
    O = lin.shape[1]

    # Row tile: 512 rows (f32) pipelines well; shrink to the (8-rounded) batch
    # for tiny N so the block equals the full array.
    tn = min(tile_n, _round_up(N, 8))
    grid = (pl.cdiv(N, tn),)

    flops = 2 * N * (D + D * D) * O + N * D * D + 2 * N * O
    bytes_accessed = 4 * (N * D + D * O + D * D * O + O + N * O)
    # Double-buffered x/out tiles + resident weights, plus headroom.  Cap at
    # 64 MiB so the request stays within v7x physical VMEM.
    vmem_need = (2 * (tn * D + tn * O) + D * O + D * D * O + O) * 4 + (1 << 20)
    vmem_limit = int(min(64 * 1024 * 1024, max(vmem_need, 16 * 1024 * 1024)))

    return pl.pallas_call(
        _sdiag_kernel,
        out_shape=jax.ShapeDtypeStruct((N, O), x.dtype),
        grid_spec=pltpu.PrefetchScalarGridSpec(
            num_scalar_prefetch=0,
            grid=grid,
            in_specs=[
                pl.BlockSpec((tn, D), lambda i: (i, 0)),        # x: tiled over N
                pl.BlockSpec((D, O), lambda i: (0, 0)),         # lin: resident
                pl.BlockSpec((D * D, O), lambda i: (0, 0)),     # quad: resident
                pl.BlockSpec((1, O), lambda i: (0, 0)),         # const: resident
            ],
            out_specs=pl.BlockSpec((tn, O), lambda i: (i, 0)),
        ),
        compiler_params=pltpu.CompilerParams(
            dimension_semantics=("parallel",),
            vmem_limit_bytes=vmem_limit,
        ),
        cost_estimate=pl.CostEstimate(
            flops=flops, transcendentals=0, bytes_accessed=bytes_accessed),
    )(x, lin, quad, const)


def true_s_diag_fg_forward(x, FTlin, FTquad, Fconst, GTlin, GTquad, Gconst,
                           matrices_to_learn='FG', tile_n=512):
    """Pallas-backed equivalent of TrueSDiagFG.forward."""
    lin, quad, const = prepare_sdiag_fg_params(
        FTlin, FTquad, Fconst, GTlin, GTquad, Gconst, matrices_to_learn)
    return sdiag_fg_apply(x, lin, quad, const, tile_n=tile_n)


def _reference_forward(x, FTlin, FTquad, Fconst, GTlin, GTquad, Gconst,
                       matrices_to_learn='FG'):
    """Plain-JAX reference mirroring the PyTorch forward."""
    Fout = (x @ FTlin.T
            + jnp.einsum('ni,oij,nj->no', x, FTquad, x)
            + Fconst[None, :])
    Gout = (x @ GTlin.T
            + jnp.einsum('ni,oij,nj->no', x, GTquad, x)
            + Gconst[None, :])
    if matrices_to_learn == 'F':
        return Fout
    if matrices_to_learn == 'G':
        return Gout
    return jnp.concatenate([Fout, Gout], axis=1)


if __name__ == "__main__":
    key = jax.random.PRNGKey(0)
    N, dim = 20, 16            # small test shapes; N=20 w/ tile_n=8 -> grid=3, partial last tile
    k = jax.random.split(key, 10)

    # Deterministic synthetic model quantities (shapes from __init__ / usage).
    y = jax.random.normal(k[0], (4, dim), dtype=jnp.float32)          # observations y[t]
    G_diag = jax.random.normal(k[1], (dim,), dtype=jnp.float32)
    U_diag = jax.random.uniform(k[2], (dim,), jnp.float32, 0.5, 1.5)  # noise cov diags (>0)
    V_diag = jax.random.uniform(k[3], (dim,), jnp.float32, 0.5, 1.5)

    # G-buffers follow the __init__ formulas; F-buffers / Gconst would normally
    # be filled by advance_timestep, so give them deterministic nonzero values
    # to exercise the full forward path.
    GTlin = jnp.diag(y[0] / V_diag)
    GTquad = jnp.zeros((dim, dim, dim), jnp.float32).at[
        jnp.arange(dim), jnp.arange(dim), jnp.arange(dim)].set(-G_diag / V_diag)
    FTlin = 0.1 * jax.random.normal(k[4], (dim, dim), dtype=jnp.float32)
    FTquad = 0.1 * jax.random.normal(k[5], (dim, dim, dim), dtype=jnp.float32)
    Fconst = 0.1 * jax.random.normal(k[6], (dim,), dtype=jnp.float32)
    Gconst = 0.1 * jax.random.normal(k[7], (dim,), dtype=jnp.float32)

    # TODO(synk): advance_timestep is a host-side (state-update) routine, not part
    # of forward; it is not implemented as a kernel.

    x_T = jax.random.normal(k[8], (N, dim), dtype=jnp.float32)

    for mode in ('FG', 'F', 'G'):
        out = true_s_diag_fg_forward(x_T, FTlin, FTquad, Fconst,
                                     GTlin, GTquad, Gconst,
                                     matrices_to_learn=mode, tile_n=8)
        out = jax.block_until_ready(out)
        ref = _reference_forward(x_T, FTlin, FTquad, Fconst,
                                 GTlin, GTquad, Gconst, mode)
        np.testing.assert_allclose(np.asarray(out), np.asarray(ref),
                                   rtol=1e-5, atol=1e-5)

    # Also exercise the default (large) tile path: single full block.
    out = true_s_diag_fg_forward(x_T, FTlin, FTquad, Fconst,
                                 GTlin, GTquad, Gconst, matrices_to_learn='FG')
    out = jax.block_until_ready(out)
    ref = _reference_forward(x_T, FTlin, FTquad, Fconst, GTlin, GTquad, Gconst, 'FG')
    np.testing.assert_allclose(np.asarray(out), np.asarray(ref), rtol=1e-5, atol=1e-5)

    print("KERNEL_OK")
</pallas_src>

<mosaic_0001>
module attributes {stable_mosaic.version = 11 : i64} {
  func.func @_sdiag_kernel(%arg0: i32, %arg1: memref<8x16xf32, #tpu.memory_space<vmem>>, %arg2: memref<16x32xf32, #tpu.memory_space<vmem>>, %arg3: memref<256x32xf32, #tpu.memory_space<vmem>>, %arg4: memref<1x32xf32, #tpu.memory_space<vmem>>, %arg5: memref<8x32xf32, #tpu.memory_space<vmem>>) attributes {dimension_semantics = [#tpu.dimension_semantics<parallel>], iteration_bounds = array<i64: 3>, scalar_prefetch = 0 : i64, scratch_operands = 0 : i64, tpu.core_type = #tpu.core_type<tc>, window_params = [{transform_indices = @transform_0, window_bounds = array<i64: 8, 16>}, {pipeline_mode = #tpu.pipeline_mode<synchronous>, transform_indices = @transform_1, window_bounds = array<i64: 16, 32>}, {pipeline_mode = #tpu.pipeline_mode<synchronous>, transform_indices = @transform_2, window_bounds = array<i64: 256, 32>}, {pipeline_mode = #tpu.pipeline_mode<synchronous>, transform_indices = @transform_3, window_bounds = array<i64: 1, 32>}, {transform_indices = @transform_4, window_bounds = array<i64: 8, 32>}]} {
    %c0 = arith.constant 0 : index
    %c0_0 = arith.constant 0 : index
    %0 = vector.load %arg1[%c0, %c0_0] : memref<8x16xf32, #tpu.memory_space<vmem>>, vector<8x16xf32>
    %c0_1 = arith.constant 0 : index
    %c0_2 = arith.constant 0 : index
    %1 = vector.load %arg2[%c0_1, %c0_2] : memref<16x32xf32, #tpu.memory_space<vmem>>, vector<16x32xf32>
    %cst = arith.constant dense<0.000000e+00> : vector<8x32xf32>
    %2 = tpu.matmul %0, %1, %cst {dimension_numbers = #tpu.dot_dimension_numbers<[1], [0], [0], [1], [0, 0, 1, 1], [], []>} : vector<8x16xf32>, vector<16x32xf32>, vector<8x32xf32> -> vector<8x32xf32>
    %3 = vector.extract_strided_slice %0 {offsets = [0, 0], sizes = [8, 1], strides = [1, 1]} : vector<8x16xf32> to vector<8x1xf32>
    %4 = vector.broadcast %3 : vector<8x1xf32> to vector<8x16xf32>
    %5 = arith.mulf %0, %4 : vector<8x16xf32>
    %6 = vector.extract_strided_slice %0 {offsets = [0, 1], sizes = [8, 1], strides = [1, 1]} : vector<8x16xf32> to vector<8x1xf32>
    %7 = vector.broadcast %6 : vector<8x1xf32> to vector<8x16xf32>
    %8 = arith.mulf %0, %7 : vector<8x16xf32>
    %9 = vector.extract_strided_slice %0 {offsets = [0, 2], sizes = [8, 1], strides = [1, 1]} : vector<8x16xf32> to vector<8x1xf32>
    %10 = vector.broadcast %9 : vector<8x1xf32> to vector<8x16xf32>
    %11 = arith.mulf %0, %10 : vector<8x16xf32>
    %12 = vector.extract_strided_slice %0 {offsets = [0, 3], sizes = [8, 1], strides = [1, 1]} : vector<8x16xf32> to vector<8x1xf32>
    %13 = vector.broadcast %12 : vector<8x1xf32> to vector<8x16xf32>
    %14 = arith.mulf %0, %13 : vector<8x16xf32>
    %15 = vector.extract_strided_slice %0 {offsets = [0, 4], sizes = [8, 1], strides = [1, 1]} : vector<8x16xf32> to vector<8x1xf32>
    %16 = vector.broadcast %15 : vector<8x1xf32> to vector<8x16xf32>
    %17 = arith.mulf %0, %16 : vector<8x16xf32>
    %18 = vector.extract_strided_slice %0 {offsets = [0, 5], sizes = [8, 1], strides = [1, 1]} : vector<8x16xf32> to vector<8x1xf32>
    %19 = vector.broadcast %18 : vector<8x1xf32> to vector<8x16xf32>
    %20 = arith.mulf %0, %19 : vector<8x16xf32>
    %21 = vector.extract_strided_slice %0 {offsets = [0, 6], sizes = [8, 1], strides = [1, 1]} : vector<8x16xf32> to vector<8x1xf32>
    %22 = vector.broadcast %21 : vector<8x1xf32> to vector<8x16xf32>
    %23 = arith.mulf %0, %22 : vector<8x16xf32>
    %24 = vector.extract_strided_slice %0 {offsets = [0, 7], sizes = [8, 1], strides = [1, 1]} : vector<8x16xf32> to vector<8x1xf32>
    %25 = vector.broadcast %24 : vector<8x1xf32> to vector<8x16xf32>
    %26 = arith.mulf %0, %25 : vector<8x16xf32>
    %27 = vector.extract_strided_slice %0 {offsets = [0, 8], sizes = [8, 1], strides = [1, 1]} : vector<8x16xf32> to vector<8x1xf32>
    %28 = vector.broadcast %27 : vector<8x1xf32> to vector<8x16xf32>
    %29 = arith.mulf %0, %28 : vector<8x16xf32>
    %30 = vector.extract_strided_slice %0 {offsets = [0, 9], sizes = [8, 1], strides = [1, 1]} : vector<8x16xf32> to vector<8x1xf32>
    %31 = vector.broadcast %30 : vector<8x1xf32> to vector<8x16xf32>
    %32 = arith.mulf %0, %31 : vector<8x16xf32>
    %33 = vector.extract_strided_slice %0 {offsets = [0, 10], sizes = [8, 1], strides = [1, 1]} : vector<8x16xf32> to vector<8x1xf32>
    %34 = vector.broadcast %33 : vector<8x1xf32> to vector<8x16xf32>
    %35 = arith.mulf %0, %34 : vector<8x16xf32>
    %36 = vector.extract_strided_slice %0 {offsets = [0, 11], sizes = [8, 1], strides = [1, 1]} : vector<8x16xf32> to vector<8x1xf32>
    %37 = vector.broadcast %36 : vector<8x1xf32> to vector<8x16xf32>
    %38 = arith.mulf %0, %37 : vector<8x16xf32>
    %39 = vector.extract_strided_slice %0 {offsets = [0, 12], sizes = [8, 1], strides = [1, 1]} : vector<8x16xf32> to vector<8x1xf32>
    %40 = vector.broadcast %39 : vector<8x1xf32> to vector<8x16xf32>
    %41 = arith.mulf %0, %40 : vector<8x16xf32>
    %42 = vector.extract_strided_slice %0 {offsets = [0, 13], sizes = [8, 1], strides = [1, 1]} : vector<8x16xf32> to vector<8x1xf32>
    %43 = vector.broadcast %42 : vector<8x1xf32> to vector<8x16xf32>
    %44 = arith.mulf %0, %43 : vector<8x16xf32>
    %45 = vector.extract_strided_slice %0 {offsets = [0, 14], sizes = [8, 1], strides = [1, 1]} : vector<8x16xf32> to vector<8x1xf32>
    %46 = vector.broadcast %45 : vector<8x1xf32> to vector<8x16xf32>
    %47 = arith.mulf %0, %46 : vector<8x16xf32>
    %48 = vector.extract_strided_slice %0 {offsets = [0, 15], sizes = [8, 1], strides = [1, 1]} : vector<8x16xf32> to vector<8x1xf32>
    %49 = vector.broadcast %48 : vector<8x1xf32> to vector<8x16xf32>
    %50 = arith.mulf %0, %49 : vector<8x16xf32>
    %51 = tpu.concatenate %5, %8, %11, %14, %17, %20, %23, %26, %29, %32, %35, %38, %41, %44, %47, %50 in 1 : vector<8x16xf32>, vector<8x16xf32>, vector<8x16xf32>, vector<8x16xf32>, vector<8x16xf32>, vector<8x16xf32>, vector<8x16xf32>, vector<8x16xf32>, vector<8x16xf32>, vector<8x16xf32>, vector<8x16xf32>, vector<8x16xf32>, vector<8x16xf32>, vector<8x16xf32>, vector<8x16xf32>, vector<8x16xf32> -> vector<8x256xf32>
    %c0_3 = arith.constant 0 : index
    %c0_4 = arith.constant 0 : index
    %52 = vector.load %arg3[%c0_3, %c0_4] : memref<256x32xf32, #tpu.memory_space<vmem>>, vector<256x32xf32>
    %cst_5 = arith.constant dense<0.000000e+00> : vector<8x32xf32>
    %53 = tpu.matmul %51, %52, %cst_5 {dimension_numbers = #tpu.dot_dimension_numbers<[1], [0], [0], [1], [0, 0, 1, 1], [], []>} : vector<8x256xf32>, vector<256x32xf32>, vector<8x32xf32> -> vector<8x32xf32>
    %54 = arith.addf %2, %53 : vector<8x32xf32>
    %c0_6 = arith.constant 0 : index
    %c0_7 = arith.constant 0 : index
    %55 = vector.load %arg4[%c0_6, %c0_7] : memref<1x32xf32, #tpu.memory_space<vmem>>, vector<1x32xf32>
    %56 = vector.broadcast %55 : vector<1x32xf32> to vector<8x32xf32>
    %57 = arith.addf %54, %56 : vector<8x32xf32>
    %c0_8 = arith.constant 0 : index
    %c0_9 = arith.constant 0 : index
    %58 = vector.load %arg5[%c0_8, %c0_9] : memref<8x32xf32, #tpu.memory_space<vmem>>, vector<8x32xf32>
    tpu.vector_store %arg5[%c0_8, %c0_9], %57 {strides = array<i32>} : memref<8x32xf32, #tpu.memory_space<vmem>>, vector<8x32xf32>,
    return
  }
  func.func @transform_0(%arg0: i32) -> (i32, i32) {
    %c0_i32 = arith.constant 0 : i32
    %c0_i32_0 = arith.constant 0 : i32
    return %arg0, %c0_i32 : i32, i32
  }
  func.func @transform_1(%arg0: i32) -> (i32, i32) {
    %c0_i32 = arith.constant 0 : i32
    %c0_i32_0 = arith.constant 0 : i32
    %c0_i32_1 = arith.constant 0 : i32
    return %c0_i32, %c0_i32_0 : i32, i32
  }
  func.func @transform_2(%arg0: i32) -> (i32, i32) {
    %c0_i32 = arith.constant 0 : i32
    %c0_i32_0 = arith.constant 0 : i32
    %c0_i32_1 = arith.constant 0 : i32
    return %c0_i32, %c0_i32_0 : i32, i32
  }
  func.func @transform_3(%arg0: i32) -> (i32, i32) {
    %c0_i32 = arith.constant 0 : i32
    %c0_i32_0 = arith.constant 0 : i32
    %c0_i32_1 = arith.constant 0 : i32
    return %c0_i32, %c0_i32_0 : i32, i32
  }
  func.func @transform_4(%arg0: i32) -> (i32, i32) {
    %c0_i32 = arith.constant 0 : i32
    %c0_i32_0 = arith.constant 0 : i32
    return %arg0, %c0_i32 : i32, i32
  }
}

</mosaic_0001>

<bundles_post_ra>
// kernel: sdiag_fg_apply.1
= control target key start
LH: loop header
LB: loop body
LE: loop exit
PB: predicated region body
PF: predicated region fallthrough
CT: control target
= control target key end

     0   :  { %9 = vsyncpa [#allocation3], 0  ;;  %s1181_s0 = inlined_call_operand.vmem [shape: f32[20,16], index: 0, kind: input, shape index: {}]   ;;  %s1182_s1 = inlined_call_operand.vmem [shape: f32[16,32], index: 1, kind: input, shape index: {}]   ;;  %s1183_s2 = inlined_call_operand.vmem [shape: f32[256,32], index: 2, kind: input, shape index: {}]   ;;  %s1184_s3 = inlined_call_operand.vmem [shape: f32[1,32], index: 3, kind: input, shape index: {}]   ;;  %s1185_s4 = inlined_call_operand.hbm [shape: f32[20,32], index: 4, kind: output, shape index: {}]  }
   0x1   :  { %11 = vsyncpa [#allocation3 + $0x1], 0  ;;  %s935_s15 = smov 0   ;;  %s937_s16 = smov 0  }
   0x2   :  { %s939_s17 = smov 0   ;;  %s941_s18 = smov 0  }
   0x3 LB: > { %s956_s19 = sadd.s32 4294967295, %s881_s18   ;;  %s610_s20 = sadd.s32 4294967294, %s881_s18   ;;  %s881_s18 = sphi %s941_s18, %s1191_s18   ;;  %s877_s17 = sphi %s939_s17, %s1190_s17   ;;  %s873_s16 = sphi %s937_s16, %s1189_s16   ;;  %s869_s15 = sphi %s935_s15, %s1188_s15  }
   0x4   : > { %s960_s21 = sadd.s32 1, %s881_s18   ;;  %s113_s22 = sadd.s32 1, %s877_s17 }
   0x5   : > { %s110_s23 = ssub.s32 %s881_s18, %s960_s21  ;;  %p123_p0 = scmp.ne.s32.totalorder %s877_s17, %s873_s16 }
   0x6   : > { %p111_p1 = scmp.eq.s32.totalorder %s110_s23, 0  ;;  %p124_p2 = scmp.eq.s32.totalorder %s956_s19, 2 }
   0x7   : > { %p129_p3 = scmp.ne.s32.totalorder %s873_s16, %s869_s15  ;;  %p130_p4 = scmp.eq.s32.totalorder %s610_s20, 2 }
   0x8   : > { %s971_s24 = scalar_select %p111_p1, %s877_s17, %s113_s22  }
   0x9   : > { %p973_p5 = por %p124_p2, %p123_p0  ;;  %p977_p6 = por %p130_p4, %p129_p3 }
   0xa   : > { %p613_p7 = scmp.ge.s32.totalorder %s881_s18, 1  ;;  %p164_p8 = scmp.lt.s32.totalorder %s881_s18, 4 }
   0xc   : > { %p165_p9 = pnand %p613_p7, %p164_p8 }
   0xd   : > { %p189_p10 = scmp.lt.s32.totalorder (!%p165_p9), %s956_s19, 2  ;;  %v883_v0 = vmov (!%p165_p9), 10   ;;  %v884_v1 = vmov (!%p165_p9), 9   ;;  %v885_v3 = vmov (!%p165_p9), 2   ;;  %v886_v4 = vmov (!%p165_p9), 1   ;;  %v370_v19 = vld [vmem:[%s1183_s2 + $0x80] sm:$0xff] (!%p165_p9) }
   0xe   : > { %168 = sbr.rel (%p165_p9) target bundleno = 550 (0x226), region = 36  ;;  %769 = vset.pattern.permute.xlu1 (!%p165_p9), %v883_v0  ;;  %767 = vset.pattern.permute.xlu0 (!%p165_p9), %v884_v1  ;;  %v887_v5 = vmov (!%p165_p9), 11   ;;  %v888_v6 = vmov (!%p165_p9), 3   ;;  %v889_v7 = vmov (!%p165_p9), 12   ;;  %v890_v8 = vmov (!%p165_p9), 13   ;;  %v371_v20 = vld [vmem:[%s1183_s2 + $0x88] sm:$0xff] (!%p165_p9) }
   0xf   : > { %v891_v9 = vmov (!%p165_p9), 4   ;;  %v892_v10 = vmov (!%p165_p9), 6   ;;  %v893_v11 = vmov (!%p165_p9), 5   ;;  %v894_v12 = vmov (!%p165_p9), 8   ;;  %v354_v22 = vld [vmem:[%s1183_s2] sm:$0xff] (!%p165_p9)  ;;  %v355_v23 = vld [vmem:[%s1183_s2 + $0x8] sm:$0xff] (!%p165_p9) }
  0x10   : > { %v895_v13 = vmov (!%p165_p9), 14   ;;  %v896_v14 = vmov (!%p165_p9), 15   ;;  %v897_v15 = vmov (!%p165_p9), 7   ;;  %v898_v16 = vmov (!%p165_p9), 0   ;;  %v372_v26 = vld [vmem:[%s1183_s2 + $0x90] sm:$0xff] (!%p165_p9)  ;;  %v373_v27 = vld [vmem:[%s1183_s2 + $0x98] sm:$0xff] (!%p165_p9) }
  0x11   : > { %v667_v21 = vpack.c.bf16 (!%p165_p9), %v371_v20, %v370_v19  ;;  %v669_v24 = vpack.c.bf16 (!%p165_p9), %v355_v23, %v354_v22  ;;  %v356_v28 = vld [vmem:[%s1183_s2 + $0x10] sm:$0xff] (!%p165_p9)  ;;  %v671_v31 = vpack.c.bf16 (!%p165_p9), %v373_v27, %v372_v26  ;;  %v357_v32 = vld [vmem:[%s1183_s2 + $0x18] sm:$0xff] (!%p165_p9)  ;;  %v374_v39 = vld [vmem:[%s1183_s2 + $0xa0] sm:$0xff] (!%p165_p9)  ;;  %s899_s9 = smov (!%p165_p9), 32   ;;  %s900_s10 = smov (!%p165_p9), 16   ;;  %vm333_vm0 = vcmask (!%p165_p9), 130048  }
  0x12   : > { %v673_v36 = vpack.c.bf16 (!%p165_p9), %v357_v32, %v356_v28  ;;  %v375_v40 = vld [vmem:[%s1183_s2 + $0xa8] sm:$0xff] (!%p165_p9)  ;;  %v358_v44 = vld [vmem:[%s1183_s2 + $0x20] sm:$0xff] (!%p165_p9)  ;;  %v376_v50 = vld [vmem:[%s1183_s2 + $0xb0] sm:$0xff] (!%p165_p9)  ;;  %s901_s6 = smov (!%p165_p9), 48   ;;  %s902_s14 = smov (!%p165_p9), 64   ;;  %vm906_vm1 = vmmov (!%p165_p9), 0  }
  0x13   : > { %668 = vmatprep.subr.bf16.mxu0 (!%p165_p9), %v667_v21  ;;  %v675_v43 = vpack.c.bf16 (!%p165_p9), %v375_v40, %v374_v39  ;;  %v359_v45 = vld [vmem:[%s1183_s2 + $0x28] sm:$0xff] (!%p165_p9)  ;;  %v377_v51 = vld [vmem:[%s1183_s2 + $0xb8] sm:$0xff] (!%p165_p9)  ;;  %v360_v53 = vld [vmem:[%s1183_s2 + $0x30] sm:$0xff] (!%p165_p9)  ;;  %s905_s11 = smov (!%p165_p9), 96   ;;  %s908_s12 = smov (!%p165_p9), 112   ;;  %vm335_vm2 = vcmask (!%p165_p9), 261120  }
  0x14   : > { %670 = vmatpush3.bf16.msra.mxu0 (!%p165_p9), %v669_v24  ;;  %v677_v48 = vpack.c.bf16 (!%p165_p9), %v359_v45, %v358_v44  ;;  %v679_v52 = vpack.c.bf16 (!%p165_p9), %v377_v51, %v376_v50  ;;  %v361_v54 = vld [vmem:[%s1183_s2 + $0x38] sm:$0xff] (!%p165_p9)  ;;  %v378_v57 = vld [vmem:[%s1183_s2 + $0xc0] sm:$0xff] (!%p165_p9)  ;;  %v379_v58 = vld [vmem:[%s1183_s2 + $0xc8] sm:$0xff] (!%p165_p9)  ;;  %vm337_vm3 = vcmask (!%p165_p9), 392192   ;;  %vm339_vm4 = vcmask (!%p165_p9), 523264   ;;  %s186_s13 = sand.u32 (!%p165_p9), 1, %s873_s16  }
  0x15   : > { %s190_s27 = scalar_select %p189_p10, %s956_s19, 2  ;;  %672 = vmatprep.subr.bf16.mxu0 %v671_v31  ;;  %v681_v56 = vpack.c.bf16 %v361_v54, %v360_v53  ;;  %v362_v59 = vld [vmem:[%s1183_s2 + $0x40] sm:$0xff]  ;;  %v683_v60 = vpack.c.bf16 %v379_v58, %v378_v57  ;;  %v363_v61 = vld [vmem:[%s1183_s2 + $0x48] sm:$0xff]  ;;  %v384_v23 = vld [vmem:[%s1183_s2 + $0xf0] sm:$0xff]  ;;  %vm341_vm5 = vcmask 654336   ;;  %vm343_vm6 = vcmask 785408  }
  0x16   : > { %v685_v62 = vpack.c.bf16 %v363_v61, %v362_v59  ;;  %v385_v24 = vld [vmem:[%s1183_s2 + $0xf8] sm:$0xff]  ;;  %v368_v27 = vld [vmem:[%s1183_s2 + $0x70] sm:$0xff]  ;;  %v194_v31 = vld [vmem:[%s1182_s1] sm:$0xff]  ;;  %vm345_vm7 = vcmask 916480   ;;  %s619_s23 = sshll.u32 %s956_s19, 7  ;;  %s909_s19 = smov [#allocation2]  }
  0x17   : > { %s615_s28 = sshll.u32 %s190_s27, 3  ;;  %v695_v26 = vpack.c.bf16 %v385_v24, %v384_v23  ;;  %v369_v28 = vld [vmem:[%s1183_s2 + $0x78] sm:$0xff]  ;;  %v195_v32 = vld [vmem:[%s1182_s1 + $0x8] sm:$0xff]  ;;  %s823_s8 = sshll.u32 %s909_s19, 4  ;;  %s824_s8 = int_to_ptr.vmem [resolvable:$false] %s823_s8 }
  0x18   : > { %s192_s5 = scalar_lea.vmem %s1181_s0, %s615_s28  ;;  %674 = vmatpush3.bf16.msra.mxu0 %v673_v36  ;;  %s903_s28 = smov 80  }
  0x19   : > { %v988_v2 = vld [vmem:[%s192_s5] sm:$0xff]  ;;  %676 = vmatprep.subr.bf16.mxu0 %v675_v43  ;;  %s1138_s5 = scalar_lea.hbm %s1185_s4, %s619_s23 }
  0x1a   : > { %248 = vperm.xlu1 %769, %v988_v2   ;;  %243 = vperm.xlu0 %767, %v988_v2  }
  0x1c   : > { %678 = vmatpush3.bf16.msra.mxu0 %v677_v48 }
  0x1d   : > { %680 = vmatprep.subr.bf16.mxu0 %v679_v52 }
  0x1e   : > { %770 = vset.pattern.permute.xlu1 %v885_v3  ;;  %768 = vset.pattern.permute.xlu0 %v886_v4  ;;  %v380_v4 = vld [vmem:[%s1183_s2 + $0xd0] sm:$0xff] }
  0x1f   : > { %208 = vperm.xlu1 %770, %v988_v2   ;;  %203 = vperm.xlu0 %768, %v988_v2  }
  0x20   : > { %682 = vmatpush3.bf16.msra.mxu0 %v681_v56 }
  0x21   : > { %684 = vmatprep.subr.bf16.mxu0 %v683_v60 }
  0x23   : > { %771 = vset.pattern.permute.xlu1 %v887_v5  ;;  %772 = vset.pattern.permute.xlu0 %v888_v6  ;;  %v381_v5 = vld [vmem:[%s1183_s2 + $0xd8] sm:$0xff] }
  0x24   : > { %253 = vperm.xlu1 %771, %v988_v2   ;;  %213 = vperm.xlu0 %772, %v988_v2   ;;  %v687_v6 = vpack.c.bf16 %v381_v5, %v380_v4 }
  0x25   : > { %686 = vmatpush3.bf16.msra.mxu0 %v685_v62 }
  0x26   : > { %688 = vmatprep.subr.bf16.mxu0 %v687_v6 }
  0x28   : > { %773 = vset.pattern.permute.xlu1 %v889_v7  ;;  %775 = vset.pattern.permute.xlu0 %v890_v8  ;;  %v364_v7 = vld [vmem:[%s1183_s2 + $0x50] sm:$0xff]  ;;  %v365_v8 = vld [vmem:[%s1183_s2 + $0x58] sm:$0xff] }
  0x29   : > { %258 = vperm.xlu1 %773, %v988_v2   ;;  %263 = vperm.xlu0 %775, %v988_v2  }
  0x2d   : > { %774 = vset.pattern.permute.xlu1 %v891_v9  ;;  %778 = vset.pattern.permute.xlu0 %v892_v10  ;;  %v382_v9 = vld [vmem:[%s1183_s2 + $0xe0] sm:$0xff] }
  0x2e   : > { %218 = vperm.xlu1 %774, %v988_v2   ;;  %228 = vperm.xlu0 %778, %v988_v2  }
  0x32   : > { %776 = vset.pattern.permute.xlu1 %v893_v11  ;;  %781 = vset.pattern.permute.xlu0 %v894_v12  ;;  %v689_v11 = vpack.c.bf16 %v365_v8, %v364_v7  ;;  %v383_v12 = vld [vmem:[%s1183_s2 + $0xe8] sm:$0xff] }
  0x33   : > { %223 = vperm.xlu1 %776, %v988_v2   ;;  %238 = vperm.xlu0 %781, %v988_v2  }
  0x34   : > { %690 = vmatpush3.bf16.msra.mxu0 %v689_v11 }
  0x37   : > { %777 = vset.pattern.permute.xlu1 %v895_v13  ;;  %818 = vset.pattern.permute.xlu0 %v896_v14  ;;  %v366_v13 = vld [vmem:[%s1183_s2 + $0x60] sm:$0xff] }
  0x38   : > { %268 = vperm.xlu1 %777, %v988_v2  }
  0x3c   : > { %779 = vset.pattern.permute.xlu1 %v896_v14  ;;  %v367_v14 = vld [vmem:[%s1183_s2 + $0x68] sm:$0xff] }
  0x3d   : > { %273 = vperm.xlu1 %779, %v988_v2  }
  0x41   : > { %780 = vset.pattern.permute.xlu1 %v897_v15 }
  0x42   : > { %233 = vperm.xlu1 %780, %v988_v2  }
  0x46   : > { %782 = vset.pattern.permute.xlu1 %v898_v16  ;;  %v691_v16 = vpack.c.bf16 %v383_v12, %v382_v9 }
  0x47   : > { %198 = vperm.xlu1 %782, %v988_v2  }
  0x48   : > { %692 = vmatprep.subr.bf16.mxu0 %v691_v16 }
  0x99   : > { %v249_v17 = vpop.permute.xlu1 %248  ;;  %v244_v18 = vpop.permute.xlu0 %243 }
  0x9a   : > { %v246_v25 = vmul.f32 %v244_v18, %v988_v2  ;;  %v251_v33 = vmul.f32 %v249_v17, %v988_v2  ;;  %v693_v18 = vpack.c.bf16 %v367_v14, %v366_v13 }
  0x9c   : > { %694 = vmatpush3.bf16.msra.mxu0 %v693_v18 }
  0x9d   : > { %696 = vmatprep.subr.bf16.mxu0 %v695_v26 }
  0x9e   : > { %v209_v29 = vpop.permute.xlu1 %208  ;;  %v204_v30 = vpop.permute.xlu0 %203 }
  0x9f   : > { %v211_v34 = vmul.f32 %v209_v29, %v988_v2  ;;  %v206_v35 = vmul.f32 %v204_v30, %v988_v2  ;;  %v697_v30 = vpack.c.bf16 %v369_v28, %v368_v27 }
  0xa1   : > { %v788_v37 = vpack.i.bf16 %v211_v34, %v251_v33  ;;  %v783_v38 = vpack.i.bf16 %v206_v35, %v246_v25  ;;  %698 = vmatpush3.bf16.msra.mxu0 %v697_v30  ;;  %v904_v34 = vmov 0.0|0.0   ;;  %v700_v35 = vpack.c.bf16 %v195_v32, %v194_v31 }
  0xa2   : > { %699 = vmatprep.subr.bf16.mxu1 %v904_v34 }
  0xa3   : > { %v254_v41 = vpop.permute.xlu1 %253  ;;  %789 = vrot.lane.b32.xlu0 %v788_v37, %s899_s9  ;;  %784 = vrot.lane.b32.xlu1 %v783_v38, %s900_s10  ;;  %v214_v42 = vpop.permute.xlu0 %213  ;;  %v907_v37 = vmov 0.0   ;;  %s825_s9 = scalar_lea.vmem %s824_s8, 256 }
  0xa4   : > { %v256_v46 = vmul.f32 %v254_v41, %v988_v2  ;;  %v216_v47 = vmul.f32 %v214_v42, %v988_v2  ;;  %701 = vmatpush3.bf16.msra.mxu1 %v700_v35  ;;  %664 = vmatprep.mubr.msk.f32.mxu1 %vm906_vm1, %v907_v37 }
  0xa6   : > { %v793_v49 = vpack.i.bf16 %v216_v47, %v256_v46 }
  0xa7   : > { %665 = vmatmul.mubr.msk.f32.vlgmr.msra.gmra.mrb[0].mxu1 %vm333_vm0, %v988_v2 }
  0xa8   : > { %v259_v55 = vpop.permute.xlu1 %258  ;;  %794 = vrot.lane.b32.xlu1 %v793_v49, %s901_s6  ;;  %v264_v0 = vpop.permute.xlu0 %263  ;;  %s538_s6 = scalar_lea.sflag [#allocation3], %s186_s13 }
  0xa9   : > { %v261_v1 = vmul.f32 %v259_v55, %v988_v2  ;;  %v266_v15 = vmul.f32 %v264_v0, %v988_v2 }
  0xad   : > { %v219_v63 = vpop.permute.xlu1 %218  ;;  %v229_v20 = vpop.permute.xlu0 %228 }
  0xae   : > { %v221_v3 = vmul.f32 %v219_v63, %v988_v2  ;;  %v231_v22 = vmul.f32 %v229_v20, %v988_v2 }
  0xb0   : > { %v798_v10 = vpack.i.bf16 %v221_v3, %v261_v1 }
  0xb2   : > { %v224_v17 = vpop.permute.xlu1 %223  ;;  %799 = vrot.lane.b32.xlu0 %v798_v10, %s902_s14  ;;  %v239_v43 = vpop.permute.xlu0 %238  ;;  %s614_s14 = sshll.u32 %s186_s13, 3 }
  0xb3   : > { %v226_v19 = vmul.f32 %v224_v17, %v988_v2  ;;  %v241_v48 = vmul.f32 %v239_v43, %v988_v2  ;;  %s188_s27 = scalar_lea.vmem [#allocation2], %s614_s14 }
  0xb5   : > { %v803_v21 = vpack.i.bf16 %v226_v19, %v266_v15 }
  0xb7   : > { %v269_v25 = vpop.permute.xlu1 %268  ;;  %804 = vrot.lane.b32.xlu1 %v803_v21, %s903_s28  ;;  %s551_s28 = sshll.u32 %s188_s27, 4  ;;  %s1140_s28 = int_to_ptr.vmem [resolvable:$true] %s551_s28 }
  0xb8   : > { %v271_v29 = vmul.f32 %v269_v25, %v988_v2  ;;  %s819_s7 = scalar_lea.vmem %s1140_s28, 128  ;;  %p826_p0 = scmp.lt.s32.totalorder %s1140_s28, %s824_s8 }
  0xb9   : > { %p820_p11 = scmp.ne.s32.totalorder %s1140_s28, %s819_s7  ;;  %p827_p1 = scmp.lt.s32.totalorder %s825_s9, %s819_s7 }
  0xba   : > { %v808_v33 = vpack.i.bf16 %v231_v22, %v271_v29  ;;  %v617_v22 = vld [vmem:[%s1184_s3] ss:$0 sm:$0xff] }
  0xbb   : > { %p821_p12 = pnand %p820_p11, %p973_p5  ;;  %p828_p2 = por %p827_p1, %p826_p0 }
  0xbc   : > { %v274_v36 = vpop.permute.xlu1 %273  ;;  %809 = vrot.lane.b32.xlu0 %v808_v33, %s905_s11 }
  0xbd   : > { %v276_v39 = vmul.f32 %v274_v36, %v988_v2  ;;  %p822_p13 = pneg %p821_p12 }
  0xbf   : > { %p829_p3 = pnand %p828_p2, %p822_p13 }
  0xc1   : > { %v234_v38 = vpop.permute.xlu1 %233 }
  0xc2   : > { %v236_v40 = vmul.f32 %v234_v38, %v988_v2 }
  0xc4   : > { %v813_v41 = vpack.i.bf16 %v236_v40, %v276_v39 }
  0xc6   : > { %814 = vrot.lane.b32.xlu1 %v813_v41, %s908_s12  ;;  %v199_v42 = vpop.permute.xlu1 %198 }
  0xc7   : > { %v201_v47 = vmul.f32 %v199_v42, %v988_v2 }
 0x115   : > { %v785_v44 = vpop.permute.xlu1 %784  ;;  %v790_v45 = vpop.permute.xlu0 %789 }
 0x116   : > { %v787_v49 = vunpack.i.h.bf16 %v785_v44  ;;  %v786_v50 = vunpack.i.l.bf16 %v785_v44  ;;  %v792_v52 = vunpack.i.h.bf16 %v790_v45  ;;  %v791_v53 = vunpack.i.l.bf16 %v790_v45 }
 0x118   : > { %v334_v55 = vsel %vm333_vm0, %v201_v47, %v787_v49  ;;  %v347_v56 = vsel %vm333_vm0, %v241_v48, %v786_v50 }
 0x119   : > { %v336_v63 = vsel %vm335_vm2, %v334_v55, %v792_v52  ;;  %v348_v0 = vsel %vm335_vm2, %v347_v56, %v791_v53 }
 0x11a   : > { %v795_v46 = vpop.permute.xlu1 %794 }
 0x11b   : > { %v797_v57 = vunpack.i.h.bf16 %v795_v46  ;;  %v796_v58 = vunpack.i.l.bf16 %v795_v46 }
 0x11d   : > { %v338_v4 = vsel %vm337_vm3, %v336_v63, %v797_v57  ;;  %v349_v5 = vsel %vm337_vm3, %v348_v0, %v796_v58 }
 0x124   : > { %v800_v51 = vpop.permute.xlu0 %799 }
 0x125   : > { %v802_v60 = vunpack.i.h.bf16 %v800_v51  ;;  %v801_v61 = vunpack.i.l.bf16 %v800_v51 }
 0x127   : > { %v340_v6 = vsel %vm339_vm4, %v338_v4, %v802_v60  ;;  %v350_v7 = vsel %vm339_vm4, %v349_v5, %v801_v61 }
 0x129   : > { %v805_v54 = vpop.permute.xlu1 %804 }
 0x12a   : > { %v807_v62 = vunpack.i.h.bf16 %v805_v54  ;;  %v806_v2 = vunpack.i.l.bf16 %v805_v54 }
 0x12c   : > { %v351_v11 = vsel %vm341_vm5, %v350_v7, %v806_v2  ;;  %v342_v12 = vsel %vm341_vm5, %v340_v6, %v807_v62 }
 0x12e   : > { %v810_v59 = vpop.permute.xlu0 %809 }
 0x12f   : > { %v812_v1 = vunpack.i.h.bf16 %v810_v59  ;;  %v811_v3 = vunpack.i.l.bf16 %v810_v59 }
 0x131   : > { %v352_v13 = vsel %vm343_vm6, %v351_v11, %v811_v3  ;;  %v344_v14 = vsel %vm343_vm6, %v342_v12, %v812_v1 }
 0x138   : > { %v815_v8 = vpop.permute.xlu1 %814 }
 0x139   : > { %v817_v9 = vunpack.i.h.bf16 %v815_v8  ;;  %v816_v10 = vunpack.i.l.bf16 %v815_v8 }
 0x13b   : > { %v353_v15 = vsel %vm345_vm7, %v352_v13, %v816_v10  ;;  %v346_v16 = vsel %vm345_vm7, %v344_v14, %v817_v9 }
 0x13c   : > { %450 = vmatprep.mubr.f32.mxu0 %v353_v15 }
 0x13d   : > { %451 = vmatmul.mubr.f32.vlgmr.msra.gmra.mrb[0].mxu0 %v346_v16 }
 0x17a   : > { %v524_v17 = vpop.f32.mrb[0].mxu1 }
 0x17b   : > { %v666_v18 = vpop.f32.mrb[1].mxu1 }
 0x210   : > { %v654_v19 = vpop.f32.mrb[0].mxu0 }
 0x211   : > { %v655_v20 = vpop.f32.mrb[1].mxu0 }
 0x212   : > { %v656_v21 = vadd.f32 %v655_v20, %v654_v19 }
 0x214   : > { %v525_v23 = vadd.f32 %v656_v21, %v524_v17 }
 0x216   : > { %v535_v24 = vadd.f32 %v617_v22, %v525_v23 }
 0x218   : > { %536 = vst.msk [vmem:[%s188_s27] sm:$0xff] %vm335_vm2, %v535_v24 }
 0x219   : > { %832 = shalt.err (!%p829_p3)
}
 0x21a   : > { %s833_s10 = scalar_lea.hbm %s1138_s5, 128  ;;  %s837_s13 = scalar_lea.hbm %s1185_s4, 384 }
 0x21b   : > { %p834_p4 = scmp.ne.s32.totalorder %s1138_s5, %s833_s10  ;;  %p838_p9 = scmp.lt.u32.totalorder %s1138_s5, %s1185_s4 }
 0x21c   : > { %p839_p10 = scmp.lt.u32.totalorder %s837_s13, %s833_s10  ;;  %p841_p12 = scmp.lt.u32.totalorder %s833_s10, %s1138_s5 }
 0x21d   : > { %p835_p7 = pnand %p834_p4, %p973_p5 }
 0x21e   : > { %p840_p11 = por %p839_p10, %p838_p9 }
 0x21f   : > { %p836_p8 = pneg %p835_p7 }
 0x220   : > { %p842_p13 = por %p841_p12, %p840_p11 }
 0x222   : > { %p843_p0 = pnand %p842_p13, %p836_p8 }
 0x224   : > { %846 = shalt.err (!%p843_p0)
}
 0x225   : > { %702 = dma.vmem_to_hbm [thread:$0]  (%p973_p5), %s1140_s28, 128, %s1138_s5, %s538_s6  }
 0x226 PF: > { %p708_p1 = scmp.ge.s32.totalorder %s881_s18, 2  ;;  %s563_s22 = sand.u32 1, %s869_s15  }
 0x227   : > { %s564_s23 = scalar_lea.sflag [#allocation3], %s563_s22 }
 0x228   : > { %p705_p2 = pnand %p708_p1, %p977_p6 }
 0x22a   : > { %864 = dma.done.wait (!%p705_p2), %s564_s23, 128  }
 0x22b   : > { %866 = vsyncadd (!%p705_p2), %s564_s23, 4294967168  ;;  %p14_p3 = scmp.ge.s32.totalorder %s960_s21, 5   ;;  %s1188_s15 = smov %s873_s16 }
 0x22c   : > { %s1189_s16 = smov %s877_s17  ;;  %s1190_s17 = smov %s971_s24 }
 0x22d   : > { %s1191_s18 = smov %s960_s21  ;;  %16 = sbr.rel (!%p14_p3) target bundleno = 3 (0x3), region = 71 }
 0x234   :  { %569 = vsyncpa [#allocation3], 1 }
 0x235   :  { %571 = vsyncpa [#allocation3 + $0x1], 1 }

</bundles_post_ra>
